<compile_context>
chip_gen: v7x
topology: tpu7x:2x2x1
jax: 0.10.0
libtpu: 0.0.40
codegen_flags: <defaults>
</compile_context>

<pallas_src>
import functools

import jax
import jax.numpy as jnp
from jax.experimental import pallas as pl
from jax.experimental.pallas import tpu as pltpu


def _round_up(x, m):
    return ((x + m - 1) // m) * m


def mlp1_kernel(x_ref, w1_ref, b1_ref, w2_ref, b2_ref, o_ref, *, hidden_dtype):
    # Layer 1 on the MXU (K = P*D lanes are dense after packing); f32 accumulate.
    h = jnp.dot(x_ref[...], w1_ref[...], preferred_element_type=jnp.float32)
    h = jnp.tanh(h + b1_ref[...])                       # f32 bias add + EUP tanh
    # Optionally narrow the (tile, P*H) intermediate before the second matmul.
    h = h.astype(hidden_dtype)
    y = jnp.dot(h, w2_ref[...], preferred_element_type=jnp.float32)
    o_ref[...] = (y + b2_ref[0, 0]).astype(o_ref.dtype)


def _pack_factor(n, d):
    """Largest P with P*D == 128 (P a power of two) that also divides N."""
    if d <= 0 or d > 128 or (128 % d) != 0:
        return 1
    p = 128 // d
    while p > 1 and (n % p) != 0:
        p //= 2
    return p


def _block_diag_w1(w1, p):
    d, h = w1.shape
    eye = jnp.eye(p, dtype=w1.dtype)
    return jnp.einsum("ij,dh->idjh", eye, w1).reshape(p * d, p * h)


def _block_diag_w2(w2_row, p, dtype):
    h = w2_row.shape[1]
    eye = jnp.eye(p, dtype=dtype)
    return jnp.einsum("ij,h->ihj", eye, w2_row[0].astype(dtype)).reshape(p * h, p)


def mlp1_forward(x, w1, b1, w2_row, b2, *, block_n=8192, hidden_dtype=jnp.float32):
    """Fused MLP1 forward: tanh(x @ w1 + b1) @ w2_row.T + b2.

    x:      (N, D)
    w1:     (D, H)   -- nn.Linear(D, H).weight transposed
    b1:     (1, H)
    w2_row: (1, H)   -- nn.Linear(H, 1).weight (row vector)
    b2:     (1, 1)
    returns (N, 1) float32
    """
    N, D = x.shape
    H = w1.shape[1]
    assert w1.shape == (D, H) and b1.shape == (1, H)
    assert w2_row.shape == (1, H) and b2.shape == (1, 1)

    x_itemsize = jnp.dtype(x.dtype).itemsize
    h_itemsize = jnp.dtype(hidden_dtype).itemsize

    # ---- Lane-pack P rows of x into one 128-lane row (P = 1 -> plain layout).
    p = _pack_factor(N, D)
    rows = N // p
    xk = D * p          # packed K (== 128 on the fast path)
    cols = H * p        # packed hidden width

    x_p = x.reshape(rows, xk)
    w1_p = _block_diag_w1(w1, p).astype(x.dtype)        # tiny, VMEM-resident
    b1_p = jnp.tile(b1, (1, p)).astype(jnp.float32)
    w2_p = _block_diag_w2(w2_row, p, hidden_dtype)
    b2_s = b2.astype(jnp.float32)

    # ---- Tile the packed rows.  Big tiles amortize per-step overhead; split a
    # large single step into >=2 so both v7x TensorCores get work.
    max_tr = _round_up(max(8, block_n // p), 8)
    if rows <= max_tr:
        tr = rows
        if rows >= 1024:
            tr = _round_up((rows + 1) // 2, 8)
    else:
        tr = max_tr

    # ---- VMEM budget: double-buffered x / out blocks, resident weights, and
    # the per-step intermediates.  Keep under ~40 MiB (fits v7x's 64 MiB/TC).
    def vmem_bytes(t):
        return (2 * t * xk * x_itemsize                       # x blocks (2 bufs)
                + 2 * t * max(p, 128) * 4                     # out blocks (lane pad)
                + t * cols * (4 + h_itemsize)                 # h (f32) + h (narrow)
                + xk * cols * x_itemsize + cols * 4           # w1 + b1
                + cols * p * h_itemsize)                      # w2

    budget = 40 * 1024 * 1024
    while tr > 8 and vmem_bytes(tr) > budget:
        tr = max(8, _round_up(tr // 2, 8))

    grid = (pl.cdiv(rows, tr),)
    vmem_limit = int(min(max(2 * vmem_bytes(tr) + (4 << 20), 32 << 20), 48 << 20))

    cost = pl.CostEstimate(
        flops=2 * N * D * H + 2 * N * H,
        transcendentals=N * H,
        bytes_accessed=(N * D * x_itemsize + xk * cols * x_itemsize
                        + cols * 4 + cols * p * h_itemsize + 4 + N * 4),
    )

    out = pl.pallas_call(
        functools.partial(mlp1_kernel, hidden_dtype=hidden_dtype),
        out_shape=jax.ShapeDtypeStruct((rows, p), jnp.float32),
        grid=grid,
        in_specs=[
            pl.BlockSpec((tr, xk), lambda i: (i, 0)),            # streamed x
            pl.BlockSpec((xk, cols), lambda i: (0, 0)),          # resident w1
            pl.BlockSpec((1, cols), lambda i: (0, 0)),           # resident b1
            pl.BlockSpec((cols, p), lambda i: (0, 0)),           # resident w2
            pl.BlockSpec(memory_space=pltpu.MemorySpace.SMEM),   # b2 scalar
        ],
        out_specs=pl.BlockSpec((tr, p), lambda i: (i, 0)),
        compiler_params=pltpu.CompilerParams(
            dimension_semantics=("parallel",),                   # v7x: 2 TCs
            vmem_limit_bytes=vmem_limit,
        ),
        cost_estimate=cost,
    )(x_p, w1_p, b1_p, w2_p, b2_s)

    return out.reshape(N, 1)


def init_params(key, input_size, hidden_size):
    """Deterministic init mimicking nn.Linear's U(-1/sqrt(fan_in), +) ranges."""
    k1, k2, k3, k4 = jax.random.split(key, 4)
    bound1 = 1.0 / jnp.sqrt(jnp.float32(input_size))
    bound2 = 1.0 / jnp.sqrt(jnp.float32(hidden_size))
    w1 = jax.random.uniform(k1, (input_size, hidden_size), jnp.float32, -bound1, bound1)
    b1 = jax.random.uniform(k2, (1, hidden_size), jnp.float32, -bound1, bound1)
    w2_row = jax.random.uniform(k3, (1, hidden_size), jnp.float32, -bound2, bound2)
    b2 = jax.random.uniform(k4, (1, 1), jnp.float32, -bound2, bound2)
    return w1, b1, w2_row, b2


def _reference(x, w1, b1, w2_row, b2):
    return jnp.tanh(x @ w1 + b1) @ w2_row.T + b2


if __name__ == "__main__":
    key = jax.random.PRNGKey(0)
    kx1, kx2, kx3, kp1, kp2 = jax.random.split(key, 5)

    # 1) Small shape, packed fast path (D=16 -> 8 rows per 128-lane vreg row).
    N1, D1, H1 = 64, 16, 32
    x1 = jax.random.normal(kx1, (N1, D1), jnp.float32)
    w1, b1, w2_row, b2 = init_params(kp1, D1, H1)
    out1 = jax.block_until_ready(mlp1_forward(x1, w1, b1, w2_row, b2))
    ref1 = _reference(x1, w1, b1, w2_row, b2)
    assert out1.shape == (N1, 1)
    assert jnp.allclose(out1, ref1, atol=1e-5, rtol=1e-5)

    # 2) Multi-step grid with a ragged tail (block_n=128 -> 16 packed rows/step,
    #    528 rows -> 66 packed rows -> 5 grid steps).
    N2 = 528
    x2 = jax.random.normal(kx2, (N2, D1), jnp.float32)
    out2 = jax.block_until_ready(mlp1_forward(x2, w1, b1, w2_row, b2, block_n=128))
    ref2 = _reference(x2, w1, b1, w2_row, b2)
    assert out2.shape == (N2, 1)
    assert jnp.allclose(out2, ref2, atol=1e-5, rtol=1e-5)

    # 3) bf16 intermediate for the second layer (f32 accumulation), loose tol.
    out3 = jax.block_until_ready(
        mlp1_forward(x2, w1, b1, w2_row, b2, block_n=128, hidden_dtype=jnp.bfloat16))
    assert jnp.allclose(out3, ref2, atol=5e-2, rtol=5e-2)

    # 4) General fallback (D does not divide 128 -> no packing, P=1).
    N4, D4, H4 = 12, 24, 32
    x4 = jax.random.normal(kx3, (N4, D4), jnp.float32)
    w1b, b1b, w2b, b2b = init_params(kp2, D4, H4)
    out4 = jax.block_until_ready(mlp1_forward(x4, w1b, b1b, w2b, b2b))
    ref4 = _reference(x4, w1b, b1b, w2b, b2b)
    assert out4.shape == (N4, 1)
    assert jnp.allclose(out4, ref4, atol=1e-5, rtol=1e-5)

    print("KERNEL_OK")
</pallas_src>

<mosaic_0001>
module attributes {stable_mosaic.version = 11 : i64} {
  func.func @mlp1_kernel(%arg0: i32, %arg1: memref<8x128xf32, #tpu.memory_space<vmem>>, %arg2: memref<128x256xf32, #tpu.memory_space<vmem>>, %arg3: memref<1x256xf32, #tpu.memory_space<vmem>>, %arg4: memref<256x8xf32, #tpu.memory_space<vmem>>, %arg5: memref<1x1xf32, #tpu.memory_space<smem>>, %arg6: memref<8x8xf32, #tpu.memory_space<vmem>>) attributes {dimension_semantics = [#tpu.dimension_semantics<parallel>], iteration_bounds = array<i64: 1>, scalar_prefetch = 0 : i64, scratch_operands = 0 : i64, tpu.core_type = #tpu.core_type<tc>, window_params = [{transform_indices = @transform_0, window_bounds = array<i64: 8, 128>}, {pipeline_mode = #tpu.pipeline_mode<synchronous>, transform_indices = @transform_1, window_bounds = array<i64: 128, 256>}, {pipeline_mode = #tpu.pipeline_mode<synchronous>, transform_indices = @transform_2, window_bounds = array<i64: 1, 256>}, {pipeline_mode = #tpu.pipeline_mode<synchronous>, transform_indices = @transform_3, window_bounds = array<i64: 256, 8>}, {transform_indices = @transform_4, window_bounds = array<i64: 1, 1>}, {transform_indices = @transform_5, window_bounds = array<i64: 8, 8>}]} {
    %c0 = arith.constant 0 : index
    %c0_0 = arith.constant 0 : index
    %0 = vector.load %arg1[%c0, %c0_0] : memref<8x128xf32, #tpu.memory_space<vmem>>, vector<8x128xf32>
    %c0_1 = arith.constant 0 : index
    %c0_2 = arith.constant 0 : index
    %1 = vector.load %arg2[%c0_1, %c0_2] : memref<128x256xf32, #tpu.memory_space<vmem>>, vector<128x256xf32>
    %cst = arith.constant dense<0.000000e+00> : vector<8x256xf32>
    %2 = tpu.matmul %0, %1, %cst {dimension_numbers = #tpu.dot_dimension_numbers<[1], [0], [0], [1], [0, 0, 1, 1], [], []>} : vector<8x128xf32>, vector<128x256xf32>, vector<8x256xf32> -> vector<8x256xf32>
    %c0_3 = arith.constant 0 : index
    %c0_4 = arith.constant 0 : index
    %3 = vector.load %arg3[%c0_3, %c0_4] : memref<1x256xf32, #tpu.memory_space<vmem>>, vector<1x256xf32>
    %4 = vector.broadcast %3 : vector<1x256xf32> to vector<8x256xf32>
    %5 = arith.addf %2, %4 : vector<8x256xf32>
    %6 = math.tanh %5 : vector<8x256xf32>
    %c0_5 = arith.constant 0 : index
    %c0_6 = arith.constant 0 : index
    %7 = vector.load %arg4[%c0_5, %c0_6] : memref<256x8xf32, #tpu.memory_space<vmem>>, vector<256x8xf32>
    %cst_7 = arith.constant dense<0.000000e+00> : vector<8x8xf32>
    %8 = tpu.matmul %6, %7, %cst_7 {dimension_numbers = #tpu.dot_dimension_numbers<[1], [0], [0], [1], [0, 0, 1, 1], [], []>} : vector<8x256xf32>, vector<256x8xf32>, vector<8x8xf32> -> vector<8x8xf32>
    %c0_8 = arith.constant 0 : index
    %c0_9 = arith.constant 0 : index
    %9 = memref.load %arg5[%c0_8, %c0_9] : memref<1x1xf32, #tpu.memory_space<smem>>
    %10 = vector.broadcast %9 : f32 to vector<8x8xf32>
    %11 = arith.addf %8, %10 : vector<8x8xf32>
    %c0_10 = arith.constant 0 : index
    %c0_11 = arith.constant 0 : index
    %12 = vector.load %arg6[%c0_10, %c0_11] : memref<8x8xf32, #tpu.memory_space<vmem>>, vector<8x8xf32>
    tpu.vector_store %arg6[%c0_10, %c0_11], %11 {strides = array<i32>} : memref<8x8xf32, #tpu.memory_space<vmem>>, vector<8x8xf32>,
    return
  }
  func.func @transform_0(%arg0: i32) -> (i32, i32) {
    %c0_i32 = arith.constant 0 : i32
    %c0_i32_0 = arith.constant 0 : i32
    return %arg0, %c0_i32 : i32, i32
  }
  func.func @transform_1(%arg0: i32) -> (i32, i32) {
    %c0_i32 = arith.constant 0 : i32
    %c0_i32_0 = arith.constant 0 : i32
    %c0_i32_1 = arith.constant 0 : i32
    return %c0_i32, %c0_i32_0 : i32, i32
  }
  func.func @transform_2(%arg0: i32) -> (i32, i32) {
    %c0_i32 = arith.constant 0 : i32
    %c0_i32_0 = arith.constant 0 : i32
    %c0_i32_1 = arith.constant 0 : i32
    return %c0_i32, %c0_i32_0 : i32, i32
  }
  func.func @transform_3(%arg0: i32) -> (i32, i32) {
    %c0_i32 = arith.constant 0 : i32
    %c0_i32_0 = arith.constant 0 : i32
    %c0_i32_1 = arith.constant 0 : i32
    return %c0_i32, %c0_i32_0 : i32, i32
  }
  func.func @transform_4(%arg0: i32) -> (i32, i32) {
    %c0_i32 = arith.constant 0 : i32
    %c0_i32_0 = arith.constant 0 : i32
    %c0_i32_1 = arith.constant 0 : i32
    return %c0_i32, %c0_i32_0 : i32, i32
  }
  func.func @transform_5(%arg0: i32) -> (i32, i32) {
    %c0_i32 = arith.constant 0 : i32
    %c0_i32_0 = arith.constant 0 : i32
    return %arg0, %c0_i32 : i32, i32
  }
}

</mosaic_0001>

<bundles_post_ra>
// kernel: tpu_custom_call.1
= control target key start
LH: loop header
LB: loop body
LE: loop exit
PB: predicated region body
PF: predicated region fallthrough
CT: control target
= control target key end

     0   :  { %v389_v7 = vmov 0.0   ;;  %s634_s0 = inlined_call_operand.vmem [shape: f32[8,128], index: 0, kind: input, shape index: {}]   ;;  %s635_s1 = inlined_call_operand.vmem [shape: f32[128,256], index: 1, kind: input, shape index: {}]   ;;  %s636_s2 = inlined_call_operand.vmem [shape: f32[1,256], index: 2, kind: input, shape index: {}]   ;;  %s637_s3 = inlined_call_operand.vmem [shape: f32[256,8], index: 3, kind: input, shape index: {}]   ;;  %s638_s4 = inlined_call_operand.<no memory space> [shape: f32[1,1], index: 4, kind: input, shape index: {}]   ;;  %s639_s5 = inlined_call_operand.hbm [shape: f32[8,8], index: 5, kind: output, shape index: {}]  }
   0x1   :  { %v24_v0 = vld [vmem:[%s635_s1 + $0x8] sm:$0xff]  ;;  %v26_v1 = vld [vmem:[%s635_s1 + $0x18] sm:$0xff]  ;;  %v23_v2 = vld [vmem:[%s635_s1] sm:$0xff]  ;;  %131 = vmatprep.mubr.f32.mxu0 %v389_v7 }
   0x2   :  { %v295_v3 = vpack.c.bf16 %v26_v1, %v24_v0  ;;  %v25_v4 = vld [vmem:[%s635_s1 + $0x10] sm:$0xff]  ;;  %v28_v5 = vld [vmem:[%s635_s1 + $0x28] sm:$0xff]  ;;  %v30_v6 = vld [vmem:[%s635_s1 + $0x38] sm:$0xff] }
   0x3   :  { %v297_v8 = vpack.c.bf16 %v25_v4, %v23_v2  ;;  %v299_v9 = vpack.c.bf16 %v30_v6, %v28_v5  ;;  %v27_v10 = vld [vmem:[%s635_s1 + $0x20] sm:$0xff]  ;;  %v29_v11 = vld [vmem:[%s635_s1 + $0x30] sm:$0xff]  ;;  %v32_v12 = vld [vmem:[%s635_s1 + $0x48] sm:$0xff] }
   0x4   :  { %296 = vmatprep.subr.bf16.mxu0 %v295_v3  ;;  %v34_v13 = vld [vmem:[%s635_s1 + $0x58] sm:$0xff]  ;;  %v301_v14 = vpack.c.bf16 %v29_v11, %v27_v10  ;;  %v31_v16 = vld [vmem:[%s635_s1 + $0x40] sm:$0xff]  ;;  %v33_v17 = vld [vmem:[%s635_s1 + $0x50] sm:$0xff] }
   0x5   :  { %298 = vmatpush1.bf16.msra.mxu0 %v297_v8  ;;  %v303_v15 = vpack.c.bf16 %v34_v13, %v32_v12  ;;  %v36_v18 = vld [vmem:[%s635_s1 + $0x68] sm:$0xff]  ;;  %v38_v19 = vld [vmem:[%s635_s1 + $0x78] sm:$0xff]  ;;  %v305_v20 = vpack.c.bf16 %v33_v17, %v31_v16  ;;  %v35_v22 = vld [vmem:[%s635_s1 + $0x60] sm:$0xff] }
   0x6   :  { %300 = vmatprep.subr.bf16.mxu0 %v299_v9  ;;  %v307_v21 = vpack.c.bf16 %v38_v19, %v36_v18  ;;  %v37_v23 = vld [vmem:[%s635_s1 + $0x70] sm:$0xff]  ;;  %v40_v24 = vld [vmem:[%s635_s1 + $0x88] sm:$0xff]  ;;  %v42_v25 = vld [vmem:[%s635_s1 + $0x98] sm:$0xff] }
   0x7   :  { %v39_v26 = vld [vmem:[%s635_s1 + $0x80] sm:$0xff]  ;;  %v41_v27 = vld [vmem:[%s635_s1 + $0x90] sm:$0xff]  ;;  %v157_v29 = vld [vmem:[%s637_s3 + $0x88] sm:$0xff]  ;;  %v309_v31 = vpack.c.bf16 %v37_v23, %v35_v22  ;;  %v311_v36 = vpack.c.bf16 %v42_v25, %v40_v24 }
   0x8   :  { %v156_v28 = vld [vmem:[%s637_s3 + $0x80] sm:$0xff]  ;;  %v141_v33 = vld [vmem:[%s637_s3 + $0x8] sm:$0xff]  ;;  %v158_v34 = vld [vmem:[%s637_s3 + $0x90] sm:$0xff]  ;;  %v313_v47 = vpack.c.bf16 %v41_v27, %v39_v26 }
   0x9   :  { %302 = vmatpush1.bf16.msra.mxu0 %v301_v14  ;;  %v140_v30 = vld [vmem:[%s637_s3] sm:$0xff]  ;;  %v327_v32 = vpack.c.bf16 %v157_v29, %v156_v28  ;;  %v159_v35 = vld [vmem:[%s637_s3 + $0x98] sm:$0xff]  ;;  %v142_v39 = vld [vmem:[%s637_s3 + $0x10] sm:$0xff] }
   0xa   :  { %304 = vmatprep.subr.bf16.mxu0 %v303_v15  ;;  %v329_v37 = vpack.c.bf16 %v141_v33, %v140_v30  ;;  %v331_v38 = vpack.c.bf16 %v159_v35, %v158_v34  ;;  %v143_v40 = vld [vmem:[%s637_s3 + $0x18] sm:$0xff]  ;;  %v160_v41 = vld [vmem:[%s637_s3 + $0xa0] sm:$0xff]  ;;  %v44_v42 = vld [vmem:[%s635_s1 + $0xa8] sm:$0xff] }
   0xb   :  { %v46_v43 = vld [vmem:[%s635_s1 + $0xb8] sm:$0xff]  ;;  %328 = vmatprep.subr.bf16.mxu1 %v327_v32  ;;  %v161_v44 = vld [vmem:[%s637_s3 + $0xa8] sm:$0xff]  ;;  %v43_v45 = vld [vmem:[%s635_s1 + $0xa0] sm:$0xff]  ;;  %v333_v46 = vpack.c.bf16 %v143_v40, %v142_v39 }
   0xc   :  { %330 = vmatpush3.bf16.msra.mxu1 %v329_v37  ;;  %v335_v48 = vpack.c.bf16 %v161_v44, %v160_v41  ;;  %v144_v49 = vld [vmem:[%s637_s3 + $0x20] sm:$0xff]  ;;  %v145_v50 = vld [vmem:[%s637_s3 + $0x28] sm:$0xff] }
   0xd   :  { %306 = vmatpush1.bf16.msra.mxu0 %v305_v20  ;;  %332 = vmatprep.subr.bf16.mxu1 %v331_v38 }
   0xe   :  { %308 = vmatprep.subr.bf16.mxu0 %v307_v21 }
  0x11   :  { %310 = vmatpush1.bf16.msra.mxu0 %v309_v31 }
  0x12   :  { %11 = vsyncpa [#allocation4], 0  ;;  %312 = vmatprep.subr.bf16.mxu0 %v311_v36  ;;  %v315_v51 = vpack.c.bf16 %v46_v43, %v44_v42  ;;  %v45_v52 = vld [vmem:[%s635_s1 + $0xb0] sm:$0xff]  ;;  %v163_v54 = vld [vmem:[%s637_s3 + $0xb8] sm:$0xff]  ;;  %334 = vmatpush3.bf16.msra.mxu1 %v333_v46  ;;  %v337_v57 = vpack.c.bf16 %v145_v50, %v144_v49  ;;  %v57_v34 = vlaneseq  ;;  %vm244_vm0 = vcmask 64512  }
  0x13   :  { %v162_v53 = vld [vmem:[%s637_s3 + $0xb0] sm:$0xff]  ;;  %v48_v55 = vld [vmem:[%s635_s1 + $0xc8] sm:$0xff]  ;;  %v50_v56 = vld [vmem:[%s635_s1 + $0xd8] sm:$0xff]  ;;  %v317_v58 = vpack.c.bf16 %v45_v52, %v43_v45  ;;  %336 = vmatprep.subr.bf16.mxu1 %v335_v48  ;;  %v173_v48 = vstv %s638_s4 }
  0x14   :  { %v339_v59 = vpack.c.bf16 %v163_v54, %v162_v53  ;;  %v146_v60 = vld [vmem:[%s637_s3 + $0x30] sm:$0xff]  ;;  %v147_v61 = vld [vmem:[%s637_s3 + $0x38] sm:$0xff]  ;;  %v319_v62 = vpack.c.bf16 %v50_v56, %v48_v55  ;;  %v47_v63 = vld [vmem:[%s635_s1 + $0xc0] sm:$0xff]  ;;  %v58_v35 = vshrl.u32 %v57_v34, 7 }
  0x15   :  { %314 = vmatpush1.bf16.msra.mxu0 %v313_v47  ;;  %v49_v0 = vld [vmem:[%s635_s1 + $0xd0] sm:$0xff]  ;;  %v52_v1 = vld [vmem:[%s635_s1 + $0xe8] sm:$0xff]  ;;  %v54_v2 = vld [vmem:[%s635_s1 + $0xf8] sm:$0xff]  ;;  %v341_v3 = vpack.c.bf16 %v147_v61, %v146_v60 }
  0x16   :  { %316 = vmatprep.subr.bf16.mxu0 %v315_v51  ;;  %338 = vmatpush3.bf16.msra.mxu1 %v337_v57  ;;  %v321_v4 = vpack.c.bf16 %v49_v0, %v47_v63  ;;  %v323_v5 = vpack.c.bf16 %v54_v2, %v52_v1  ;;  %v51_v6 = vld [vmem:[%s635_s1 + $0xe0] sm:$0xff]  ;;  %v53_v7 = vld [vmem:[%s635_s1 + $0xf0] sm:$0xff]  ;;  %v165_v11 = vld [vmem:[%s637_s3 + $0xc8] sm:$0xff]  ;;  %v59_v36 = vsub.s32 0, %v58_v35  ;;  %v63_v38 = vsub.s32 1, %v58_v35 }
  0x17   :  { %340 = vmatprep.subr.bf16.mxu1 %v339_v59  ;;  %v325_v8 = vpack.c.bf16 %v53_v7, %v51_v6  ;;  %v22_v9 = vld [vmem:[%s634_s0] sm:$0xff]  ;;  %v149_v14 = vld [vmem:[%s637_s3 + $0x48] sm:$0xff]  ;;  %v166_v16 = vld [vmem:[%s637_s3 + $0xd0] sm:$0xff] }
  0x18   :  { %v164_v10 = vld [vmem:[%s637_s3 + $0xc0] sm:$0xff]  ;;  %v167_v17 = vld [vmem:[%s637_s3 + $0xd8] sm:$0xff]  ;;  %v150_v19 = vld [vmem:[%s637_s3 + $0x50] sm:$0xff] }
  0x19   :  { %318 = vmatpush1.bf16.msra.mxu0 %v317_v58  ;;  %v343_v12 = vpack.c.bf16 %v165_v11, %v164_v10  ;;  %v148_v13 = vld [vmem:[%s637_s3 + $0x40] sm:$0xff]  ;;  %v347_v18 = vpack.c.bf16 %v167_v17, %v166_v16  ;;  %v151_v20 = vld [vmem:[%s637_s3 + $0x58] sm:$0xff]  ;;  %v169_v23 = vld [vmem:[%s637_s3 + $0xe8] sm:$0xff] }
  0x1a   :  { %320 = vmatprep.subr.bf16.mxu0 %v319_v62  ;;  %342 = vmatpush3.bf16.msra.mxu1 %v341_v3  ;;  %v345_v15 = vpack.c.bf16 %v149_v14, %v148_v13  ;;  %v349_v21 = vpack.c.bf16 %v151_v20, %v150_v19  ;;  %v168_v22 = vld [vmem:[%s637_s3 + $0xe0] sm:$0xff]  ;;  %v153_v26 = vld [vmem:[%s637_s3 + $0x68] sm:$0xff]  ;;  %v170_v27 = vld [vmem:[%s637_s3 + $0xf0] sm:$0xff] }
  0x1b   :  { %344 = vmatprep.subr.bf16.mxu1 %v343_v12  ;;  %v152_v24 = vld [vmem:[%s637_s3 + $0x60] sm:$0xff]  ;;  %v351_v25 = vpack.c.bf16 %v169_v23, %v168_v22  ;;  %v171_v28 = vld [vmem:[%s637_s3 + $0xf8] sm:$0xff]  ;;  %v154_v31 = vld [vmem:[%s637_s3 + $0x70] sm:$0xff] }
  0x1c   :  { %v353_v29 = vpack.c.bf16 %v153_v26, %v152_v24  ;;  %v355_v30 = vpack.c.bf16 %v171_v28, %v170_v27  ;;  %v155_v32 = vld [vmem:[%s637_s3 + $0x78] sm:$0xff]  ;;  %v55_v37 = vld [vmem:[%s636_s2] sm:$0x3]  ;;  %s390_s2 = smov [#allocation3]  }
  0x1d   :  { %322 = vmatpush1.bf16.msra.mxu0 %v321_v4  ;;  %v357_v33 = vpack.c.bf16 %v155_v32, %v154_v31  ;;  %v60_v39 = vrot.slane %v55_v37, %v59_v36  ;;  %v64_v40 = vrot.slane %v55_v37, %v63_v38  ;;  %s252_s0 = sshll.u32 %s390_s2, 4  ;;  %s253_s0 = int_to_ptr.vmem [resolvable:$true] %s252_s0 }
  0x1e   :  { %324 = vmatprep.subr.bf16.mxu0 %v323_v5  ;;  %346 = vmatpush3.bf16.msra.mxu1 %v345_v15  ;;  %s365_s23 = scalar_lea.vmem %s253_s0, 128  ;;  %p370_p1 = scmp.lt.s32.totalorder %s253_s0, %s253_s0 }
  0x1f   :  { %348 = vmatprep.subr.bf16.mxu1 %v347_v18  ;;  %p366_p0 = scmp.ne.s32.totalorder %s253_s0, %s365_s23  ;;  %p371_p2 = scmp.lt.s32.totalorder %s365_s23, %s365_s23 }
  0x21   :  { %326 = vmatpush1.bf16.msra.mxu0 %v325_v8  ;;  %p372_p3 = por %p371_p2, %p370_p1 }
  0x22   :  { %350 = vmatpush3.bf16.msra.mxu1 %v349_v21 }
  0x23   :  { %352 = vmatprep.subr.bf16.mxu1 %v351_v25  ;;  %p373_p4 = pnand %p372_p3, %p366_p0 }
  0x24   :  { %132 = vmatmul.mubr.f32.vlgmr.msra.gmra.mrb[0].mxu0 %v22_v9 }
  0x26   :  { %354 = vmatpush3.bf16.msra.mxu1 %v353_v29 }
  0x27   :  { %356 = vmatprep.subr.bf16.mxu1 %v355_v30 }
  0x2a   :  { %358 = vmatpush3.bf16.msra.mxu1 %v357_v33 }
  0xf7   :  { %v133_v41 = vpop.f32.mrb[0].mxu0 }
  0xf8   :  { %v134_v42 = vadd.f32 %v133_v41, %v60_v39  ;;  %v135_v43 = vpop.f32.mrb[1].mxu0 }
  0xf9   :  { %v136_v44 = vadd.f32 %v135_v43, %v64_v40 }
  0xfb   :  { %361 = vtanh.f32 %v136_v44 }
  0xfc   :  { %363 = vtanh.f32 %v134_v42 }
 0x105   :  { %v362_v45 = vpop.eup %361 }
 0x106   :  { %v364_v46 = vpop.eup %363  ;;  %238 = vmatprep.mubr.f32.mxu1 %v362_v45 }
 0x107   :  { %239 = vmatmul.mubr.f32.vlgmr.msra.gmra.mrb[0].mxu1 %v364_v46 }
 0x1da   :  { %v292_v47 = vpop.f32.mrb[0].mxu1 }
 0x1db   :  { %v293_v49 = vpop.f32.mrb[1].mxu1 }
 0x1dc   :  { %v294_v50 = vadd.f32 %v293_v49, %v292_v47 }
 0x1de   :  { %v241_v51 = vadd.f32 %v294_v50, %v173_v48 }
 0x1e0   :  { %245 = vst.msk [vmem:[#allocation3] sm:$0xff] %vm244_vm0, %v241_v51 }
 0x1e1   :  { %376 = shalt.err (!%p373_p4)
}
 0x1e2   :  { %s377_s26 = scalar_lea.hbm %s639_s5, 128 }
 0x1e3   :  { %p378_p5 = scmp.ne.s32.totalorder %s639_s5, %s377_s26  ;;  %p381_p6 = scmp.lt.u32.totalorder %s377_s26, %s639_s5 }
 0x1e5   :  { %p383_p7 = pnand %p381_p6, %p378_p5 }
 0x1e7   :  { %386 = shalt.err (!%p383_p7)
}
 0x1e8   :  { %255 = dma.vmem_to_hbm [thread:$0]  %s253_s0, 128, %s639_s5, [#allocation4]  }
 0x1e9   :  { %387 = dma.done.wait [#allocation4], 128  }
 0x1ea   :  { %388 = vsyncadd [#allocation4], 4294967168 }
 0x1eb   :  { %259 = vsyncpa [#allocation4], 1 }

</bundles_post_ra>
